<compile_context>
chip_gen: v7x
topology: tpu7x:2x2x1
jax: 0.10.0
libtpu: 0.0.40
codegen_flags: <defaults>
</compile_context>

<pallas_src>
import functools
import math

import jax
import jax.numpy as jnp
from jax import lax
from jax.experimental import pallas as pl
from jax.experimental.pallas import tpu as pltpu

_LANES = 128
_MAX_PACK_LANES = 512          # cap on lcm(C, 128) packing width (P is lw x lw f32)
_MAX_BLOCK_BYTES = 2 << 20     # ~2 MiB x-block -> <= ~9 MiB live VMEM (v5e-safe)


def _sublane_multiple(dtype):
    itemsize = jnp.dtype(dtype).itemsize
    return max(8, 32 // itemsize)      # 8 for f32, 16 for bf16/f16, 32 for int8/fp8


def _round_up(x, m):
    return (x + m - 1) // m * m


# ---------------------------------------------------------------------------
# Kernels
# ---------------------------------------------------------------------------
def _packed_kernel(x_ref, w_ref, p_ref, o_ref, *, eps):
    # x_ref: (tm, lw) caller dtype; each lw-lane row holds g = lw // C channel groups
    # w_ref: (1, lw)  f32; weight tiled g times (lane l -> weight[l % C])
    # p_ref: (lw, lw) f32; group-averaging matrix: P[m, l] = 1/C iff m//C == l//C
    x = x_ref[...].astype(jnp.float32)
    p = p_ref[...]
    mean_l = jnp.dot(x, p, preferred_element_type=jnp.float32,
                     precision=lax.Precision.HIGHEST)        # per-group mean, lane-broadcast
    diff = x - mean_l
    var_l = jnp.dot(diff * diff, p, preferred_element_type=jnp.float32,
                    precision=lax.Precision.HIGHEST)          # per-group var (unbiased=False)
    y = x * lax.rsqrt(var_l + eps) * w_ref[...]
    o_ref[...] = y.astype(o_ref.dtype)


def _rowwise_kernel(x_ref, w_ref, o_ref, *, eps):
    # Generic fallback: one normalization group per row (last dim = C lanes).
    x = x_ref[...].astype(jnp.float32)
    mu = jnp.mean(x, axis=-1, keepdims=True)
    var = jnp.mean((x - mu) * (x - mu), axis=-1, keepdims=True)
    o_ref[...] = (x * lax.rsqrt(var + eps) * w_ref[...]).astype(o_ref.dtype)


# ---------------------------------------------------------------------------
# Wrapper
# ---------------------------------------------------------------------------
def biasfree_layernorm(x, weight, *, eps=1e-5):
    """BiasFree LayerNorm over the last dim of `x`, scaled by `weight` (shape (C,))."""
    orig_shape = x.shape
    dtype = x.dtype
    c = orig_shape[-1]

    xr = x.reshape(-1, c)
    wf = weight.astype(jnp.float32).reshape(c)
    r = xr.shape[0]

    # Lane-dense packing: lw = lcm(C, 128) lanes per row, g = lw // C groups/row.
    lw = (c * _LANES) // math.gcd(c, _LANES)
    g = lw // c
    packed = (g > 1) and (lw <= _MAX_PACK_LANES)

    sub = _sublane_multiple(dtype)
    pad_r = 0

    if packed:
        pad_r = (-r) % g
        if pad_r:
            # <= g-1 dummy zero rows; normalized independently (var=0 -> finite), sliced off.
            xr = jnp.concatenate([xr, jnp.zeros((pad_r, c), dtype)], axis=0)
        rows = (r + pad_r) // g
        xk = xr.reshape(rows, lw)                 # contiguous row-major reshape: free
        wk = jnp.tile(wf, g).reshape(1, lw)       # lane l -> weight[l % C]
        lane = jnp.arange(lw)
        pmat = (lane[:, None] // c == lane[None, :] // c).astype(jnp.float32) / c
        kernel = functools.partial(_packed_kernel, eps=eps)
        extra_in = [pmat]
        extra_specs = [pl.BlockSpec((lw, lw), lambda i: (0, 0))]
    else:
        # TODO(synk): lane-dense packing when lcm(C, 128) exceeds the cap; this
        # fallback stores C(<128-aligned) lanes per row (masked partial stores).
        lw = c
        rows = r
        xk = xr
        wk = wf.reshape(1, c)
        kernel = functools.partial(_rowwise_kernel, eps=eps)
        extra_in = []
        extra_specs = []

    # Row tile: biggest block that (a) stays ~2 MiB so double-buffered in+out (+P)
    # fits v5e's 16 MiB scoped VMEM and stays well under v7x's 32 MiB, and
    # (b) leaves >= 2 grid steps when possible so v7x can shard the "parallel"
    # axis across both TensorCores.
    itemsize = jnp.dtype(dtype).itemsize
    tm_cap = max(sub, (_MAX_BLOCK_BYTES // (lw * itemsize)) // sub * sub)
    if rows <= sub:
        tm = rows                                  # single full block (always legal)
    else:
        tm = min(tm_cap, _round_up(pl.cdiv(rows, 2), sub))

    out = pl.pallas_call(
        kernel,
        grid=(pl.cdiv(rows, tm),),
        in_specs=[pl.BlockSpec((tm, lw), lambda i: (i, 0)),
                  pl.BlockSpec((1, lw), lambda i: (0, 0))] + extra_specs,
        out_specs=pl.BlockSpec((tm, lw), lambda i: (i, 0)),
        out_shape=jax.ShapeDtypeStruct((rows, lw), dtype),
        compiler_params=pltpu.CompilerParams(dimension_semantics=("parallel",)),
    )(xk, wk, *extra_in)

    out = out.reshape(-1, c)
    if pad_r:
        out = out[:r]
    return out.reshape(orig_shape)


# ---------------------------------------------------------------------------
# Pure-JAX reference (direct transliteration of the PyTorch forward)
# ---------------------------------------------------------------------------
def biasfree_layernorm_ref(x, weight, eps=1e-5):
    xf = x.astype(jnp.float32)
    sigma = jnp.var(xf, axis=-1, keepdims=True)        # ddof=0 == unbiased=False
    return xf / jnp.sqrt(sigma + eps) * weight.astype(jnp.float32)


# ---------------------------------------------------------------------------
if __name__ == "__main__":
    keys = jax.random.split(jax.random.PRNGKey(0), 6)
    fn = jax.jit(biasfree_layernorm)

    # Main case (mirrors mamba_module usage: tokens (B, H*W, C), LN over C). f32.
    B, N, C = 2, 64, 32
    x = 2.0 * jax.random.normal(keys[0], (B, N, C), jnp.float32) + 0.5
    w = 1.0 + 0.1 * jax.random.normal(keys[1], (C,), jnp.float32)
    out = jax.block_until_ready(fn(x, w))
    err = float(jnp.max(jnp.abs(out - biasfree_layernorm_ref(x, w))))
    assert err < 1e-3, f"packed f32 mismatch, max abs err {err}"

    # Same shapes in bf16 (I/O stays bf16; stats in f32 inside the kernel).
    xb = x.astype(jnp.bfloat16)
    outb = jax.block_until_ready(fn(xb, w))
    assert outb.dtype == jnp.bfloat16
    errb = float(jnp.max(jnp.abs(outb.astype(jnp.float32) - biasfree_layernorm_ref(xb, w))))
    assert errb < 5e-2, f"packed bf16 mismatch, max abs err {errb}"

    # Channel count that does not divide 128 -> packed via lcm(48,128)=384, with
    # row padding (20 rows % 8 groups != 0 exercises the pad path).
    B2, N2, C2 = 2, 10, 48
    x2 = jax.random.normal(keys[2], (B2, N2, C2), jnp.float32)
    w2 = 1.0 + 0.1 * jax.random.normal(keys[3], (C2,), jnp.float32)
    out2 = jax.block_until_ready(fn(x2, w2))
    err2 = float(jnp.max(jnp.abs(out2 - biasfree_layernorm_ref(x2, w2))))
    assert err2 < 1e-3, f"packed lcm-path mismatch, max abs err {err2}"

    # Channel count whose lcm with 128 exceeds the packing cap -> rowwise fallback.
    B3, N3, C3 = 1, 16, 144
    x3 = jax.random.normal(keys[4], (B3, N3, C3), jnp.float32)
    w3 = 1.0 + 0.1 * jax.random.normal(keys[5], (C3,), jnp.float32)
    out3 = jax.block_until_ready(fn(x3, w3))
    err3 = float(jnp.max(jnp.abs(out3 - biasfree_layernorm_ref(x3, w3))))
    assert err3 < 1e-3, f"rowwise-path mismatch, max abs err {err3}"

    print("KERNEL_OK")
</pallas_src>

<mosaic_0001>
module attributes {stable_mosaic.version = 11 : i64} {
  func.func @_packed_kernel(%arg0: i32, %arg1: memref<16x128xf32, #tpu.memory_space<vmem>>, %arg2: memref<1x128xf32, #tpu.memory_space<vmem>>, %arg3: memref<128x128xf32, #tpu.memory_space<vmem>>, %arg4: memref<16x128xf32, #tpu.memory_space<vmem>>) attributes {dimension_semantics = [#tpu.dimension_semantics<parallel>], iteration_bounds = array<i64: 2>, scalar_prefetch = 0 : i64, scratch_operands = 0 : i64, tpu.core_type = #tpu.core_type<tc>, window_params = [{transform_indices = @transform_0, window_bounds = array<i64: 16, 128>}, {pipeline_mode = #tpu.pipeline_mode<synchronous>, transform_indices = @transform_1, window_bounds = array<i64: 1, 128>}, {pipeline_mode = #tpu.pipeline_mode<synchronous>, transform_indices = @transform_2, window_bounds = array<i64: 128, 128>}, {transform_indices = @transform_3, window_bounds = array<i64: 16, 128>}]} {
    %c0 = arith.constant 0 : index
    %c0_0 = arith.constant 0 : index
    %0 = vector.load %arg1[%c0, %c0_0] : memref<16x128xf32, #tpu.memory_space<vmem>>, vector<16x128xf32>
    %c0_1 = arith.constant 0 : index
    %c0_2 = arith.constant 0 : index
    %1 = vector.load %arg3[%c0_1, %c0_2] : memref<128x128xf32, #tpu.memory_space<vmem>>, vector<128x128xf32>
    %cst = arith.constant dense<0.000000e+00> : vector<16x128xf32>
    %2 = tpu.matmul %0, %1, %cst {dimension_numbers = #tpu.dot_dimension_numbers<[1], [0], [0], [1], [0, 0, 1, 1], [], []>, precision = #tpu.contract_precision<fp32>} : vector<16x128xf32>, vector<128x128xf32>, vector<16x128xf32> -> vector<16x128xf32>
    %3 = arith.subf %0, %2 : vector<16x128xf32>
    %4 = arith.mulf %3, %3 : vector<16x128xf32>
    %cst_3 = arith.constant dense<0.000000e+00> : vector<16x128xf32>
    %5 = tpu.matmul %4, %1, %cst_3 {dimension_numbers = #tpu.dot_dimension_numbers<[1], [0], [0], [1], [0, 0, 1, 1], [], []>, precision = #tpu.contract_precision<fp32>} : vector<16x128xf32>, vector<128x128xf32>, vector<16x128xf32> -> vector<16x128xf32>
    %cst_4 = arith.constant 9.99999974E-6 : f32
    %6 = vector.broadcast %cst_4 : f32 to vector<16x128xf32>
    %7 = arith.addf %5, %6 : vector<16x128xf32>
    %8 = math.rsqrt %7 : vector<16x128xf32>
    %9 = arith.mulf %0, %8 : vector<16x128xf32>
    %c0_5 = arith.constant 0 : index
    %c0_6 = arith.constant 0 : index
    %10 = vector.load %arg2[%c0_5, %c0_6] : memref<1x128xf32, #tpu.memory_space<vmem>>, vector<1x128xf32>
    %11 = vector.broadcast %10 : vector<1x128xf32> to vector<16x128xf32>
    %12 = arith.mulf %9, %11 : vector<16x128xf32>
    %c0_7 = arith.constant 0 : index
    %c0_8 = arith.constant 0 : index
    %13 = vector.load %arg4[%c0_7, %c0_8] : memref<16x128xf32, #tpu.memory_space<vmem>>, vector<16x128xf32>
    tpu.vector_store %arg4[%c0_7, %c0_8], %12 {strides = array<i32>} : memref<16x128xf32, #tpu.memory_space<vmem>>, vector<16x128xf32>,
    return
  }
  func.func @transform_0(%arg0: i32) -> (i32, i32) {
    %c0_i32 = arith.constant 0 : i32
    %c0_i32_0 = arith.constant 0 : i32
    return %arg0, %c0_i32 : i32, i32
  }
  func.func @transform_1(%arg0: i32) -> (i32, i32) {
    %c0_i32 = arith.constant 0 : i32
    %c0_i32_0 = arith.constant 0 : i32
    %c0_i32_1 = arith.constant 0 : i32
    return %c0_i32, %c0_i32_0 : i32, i32
  }
  func.func @transform_2(%arg0: i32) -> (i32, i32) {
    %c0_i32 = arith.constant 0 : i32
    %c0_i32_0 = arith.constant 0 : i32
    %c0_i32_1 = arith.constant 0 : i32
    return %c0_i32, %c0_i32_0 : i32, i32
  }
  func.func @transform_3(%arg0: i32) -> (i32, i32) {
    %c0_i32 = arith.constant 0 : i32
    %c0_i32_0 = arith.constant 0 : i32
    return %arg0, %c0_i32 : i32, i32
  }
}

</mosaic_0001>

<bundles_post_ra>
// kernel: tile.8
= control target key start
LH: loop header
LB: loop body
LE: loop exit
PB: predicated region body
PF: predicated region fallthrough
CT: control target
= control target key end

     0   :  { %s22_s0 = inlined_call_operand.vmem [shape: f32[32], index: 0, kind: input, shape index: {}]   ;;  %s23_s1 = inlined_call_operand.vmem [shape: f32[4,32], index: 1, kind: output, shape index: {}]  }
   0x1   :  { %v4_v0 = vld [vmem:[%s22_s0] ss:$0 sm:$0xff] }
   0x2   :  { %5 = vst [vmem:[%s23_s1] sm:$0xf] %v4_v0 }

// kernel: tile.9
= control target key start
LH: loop header
LB: loop body
LE: loop exit
PB: predicated region body
PF: predicated region fallthrough
CT: control target
= control target key end

     0   :  { %vm7_vm0 = vcmask 261120   ;;  %s37_s8 = smov 32   ;;  %s38_s9 = smov 64   ;;  %vm13_vm1 = vcmask 1048320   ;;  %vm19_vm2 = vcmask 785920   ;;  %vm25_vm3 = vcmask 523520   ;;  %s55_s0 = inlined_call_operand.vmem [shape: f32[4,32], index: 0, kind: input, shape index: {}]   ;;  %s56_s1 = inlined_call_operand.vmem [shape: f32[1,128], index: 1, kind: output, shape index: {}]  }
   0x1   :  { %v4_v0 = vld [vmem:[%s55_s0] sm:$0xf]  ;;  %s36_s0 = smov 96  }
   0x2   :  { %5 = vst [vmem:[#allocation1] sm:$0xf] %v4_v0 }
   0x9   :  { %v10_v1 = vld [vmem:[#allocation1 + $0x3] sm:$0x1]   ;;  %v22_v2 = vld [vmem:[#allocation1 + $0x1] sm:$0x1]   ;;  %v6_v3 = vld [vmem:[#allocation1] sm:$0x1]  }
   0xa   :  { %11 = vrot.lane.b32.xlu0 %v10_v1, %s36_s0  ;;  %23 = vrot.lane.b32.xlu1 %v22_v2, %s37_s8  ;;  %v16_v4 = vld [vmem:[#allocation1 + $0x2] sm:$0x1]   ;;  %8 = vst.msk [vmem:[#allocation0] sm:$0x1] %vm7_vm0, %v6_v3  }
   0xe   :  { %17 = vrot.lane.b32.xlu0 %v16_v4, %s38_s9 }
  0x7c   :  { %v12_v5 = vpop.permute.xlu0 %11   ;;  %v24_v6 = vpop.permute.xlu1 %23  }
  0x7d   :  { %14 = vst.msk [vmem:[#allocation0] sm:$0x1] %vm13_vm1, %v12_v5  }
  0x80   :  { %v18_v7 = vpop.permute.xlu0 %17  }
  0x81   :  { %20 = vst.msk [vmem:[#allocation0] sm:$0x1] %vm19_vm2, %v18_v7  }
  0x82   :  { %26 = vst.msk [vmem:[#allocation0] sm:$0x1] %vm25_vm3, %v24_v6  }
  0x89   :  { %v30_v8 = vld [vmem:[#allocation0] sm:$0x1] }
  0x8a   :  { %32 = vst [vmem:[%s56_s1] sm:$0x1] %v30_v8 }

// kernel: biasfree_layernorm.1
= control target key start
LH: loop header
LB: loop body
LE: loop exit
PB: predicated region body
PF: predicated region fallthrough
CT: control target
= control target key end

     0   :  { %s2729_s12 = smov 0   ;;  %s3235_s0 = inlined_call_operand.vmem [shape: f32[32,128], index: 0, kind: input, shape index: {}]   ;;  %s3236_s1 = inlined_call_operand.vmem [shape: f32[1,128], index: 1, kind: input, shape index: {}]   ;;  %s3237_s2 = inlined_call_operand.vmem [shape: f32[128,128], index: 2, kind: input, shape index: {}]   ;;  %s3238_s3 = inlined_call_operand.vmem [shape: f32[32,128], index: 3, kind: output, shape index: {}]  }
   0x1 LB: > { %s1635_s13 = sadd.s32 4294967295, %s2707_s12   ;;  %p1639_p0 = scmp.ge.s32.totalorder %s2707_s12, 1  ;;  %s2707_s12 = sphi %s2729_s12, %s13_s12  }
   0x2   : > { %p138_p1 = scmp.lt.s32.totalorder %s2707_s12, 3 }
   0x4   : > { %p139_p2 = pnand %p1639_p0, %p138_p1 }
   0x5   : > { %v176_v0 = vld [vmem:[%s3237_s2] sm:$0xff] (!%p139_p2)  ;;  %v177_v1 = vld [vmem:[%s3237_s2 + $0x8] sm:$0xff] (!%p139_p2)  ;;  %v178_v2 = vld [vmem:[%s3237_s2 + $0x10] sm:$0xff] (!%p139_p2)  ;;  %s1640_s20 = sshll.u32 (!%p139_p2), %s1635_s13, 1 }
   0x6   : > { %142 = sbr.rel (%p139_p2) target bundleno = 821 (0x335), region = 32  ;;  %v193_v3 = vand.u32 (!%p139_p2), 4294901760, %v176_v0  ;;  %v196_v4 = vand.u32 (!%p139_p2), 4294901760, %v177_v1  ;;  %v179_v5 = vld [vmem:[%s3237_s2 + $0x18] sm:$0xff] (!%p139_p2)  ;;  %v199_v6 = vand.u32 (!%p139_p2), 4294901760, %v178_v2  ;;  %v180_v7 = vld [vmem:[%s3237_s2 + $0x20] sm:$0xff] (!%p139_p2) }
   0x7   : > { %v2755_v8 = vld [vmem:[%s3237_s2 + $0x28] sm:$0xff] (!%p139_p2)  ;;  %v202_v9 = vand.u32 (!%p139_p2), 4294901760, %v179_v5  ;;  %v205_v11 = vand.u32 (!%p139_p2), 4294901760, %v180_v7  ;;  %v2765_v14 = vld [vmem:[%s3237_s2 + $0x30] sm:$0xff] (!%p139_p2)  ;;  %v2770_v15 = vld [vmem:[%s3237_s2 + $0x38] sm:$0xff] (!%p139_p2)  ;;  %p163_p3 = scmp.lt.s32.totalorder (!%p139_p2), %s1640_s20, 3 }
   0x8   : > { %v2757_v10 = vpack.c.bf16 (!%p139_p2), %v196_v4, %v193_v3  ;;  %v208_v12 = vand.u32 (!%p139_p2), 4294901760, %v2755_v8  ;;  %v211_v17 = vand.u32 (!%p139_p2), 4294901760, %v2765_v14  ;;  %v214_v18 = vand.u32 (!%p139_p2), 4294901760, %v2770_v15  ;;  %v2786_v19 = vld [vmem:[%s3237_s2 + $0x40] sm:$0xff] (!%p139_p2)  ;;  %v2791_v20 = vld [vmem:[%s3237_s2 + $0x48] sm:$0xff] (!%p139_p2)  ;;  %v2805_v22 = vld [vmem:[%s3237_s2 + $0x50] sm:$0xff] (!%p139_p2) }
   0x9   : > { %v2760_v13 = vpack.c.bf16 (!%p139_p2), %v202_v9, %v199_v6  ;;  %v217_v21 = vand.u32 (!%p139_p2), 4294901760, %v2786_v19  ;;  %v220_v25 = vand.u32 (!%p139_p2), 4294901760, %v2791_v20  ;;  %v187_v26 = vld [vmem:[%s3237_s2 + $0x58] sm:$0xff] (!%p139_p2)  ;;  %v2822_v28 = vsub.f32 (!%p139_p2), %v176_v0, %v193_v3  ;;  %v188_v31 = vld [vmem:[%s3237_s2 + $0x60] sm:$0xff] (!%p139_p2)  ;;  %v189_v32 = vld [vmem:[%s3237_s2 + $0x68] sm:$0xff] (!%p139_p2) }
   0xa   : > { %2284 = vmatprep.subr.bf16.mxu0 (!%p139_p2), %v2757_v10  ;;  %2476 = vmatprep.subr.bf16.mxu1 (!%p139_p2), %v2757_v10  ;;  %v2779_v16 = vpack.c.bf16 (!%p139_p2), %v208_v12, %v205_v11  ;;  %v2813_v24 = vpack.c.bf16 (!%p139_p2), %v214_v18, %v211_v17  ;;  %v223_v30 = vand.u32 (!%p139_p2), 4294901760, %v2805_v22  ;;  %v226_v34 = vand.u32 (!%p139_p2), 4294901760, %v187_v26  ;;  %v190_v35 = vld [vmem:[%s3237_s2 + $0x70] sm:$0xff] (!%p139_p2)  ;;  %v191_v36 = vld [vmem:[%s3237_s2 + $0x78] sm:$0xff] (!%p139_p2) }
   0xb   : > { %2286 = vmatpush3.bf16.msra.mxu0 (!%p139_p2), %v2757_v10  ;;  %2478 = vmatpush3.bf16.msra.mxu1 (!%p139_p2), %v2757_v10  ;;  %v2845_v37 = vsub.f32 (!%p139_p2), %v177_v1, %v196_v4  ;;  %v2847_v38 = vsub.f32 (!%p139_p2), %v178_v2, %v199_v6  ;;  %v2849_v39 = vsub.f32 (!%p139_p2), %v179_v5, %v202_v9  ;;  %v296_v43 = vand.u32 (!%p139_p2), 4294901760, %v2822_v28 }
   0xc   : > { %2288 = vmatprep.subr.bf16.mxu0 (!%p139_p2), %v2760_v13  ;;  %2480 = vmatprep.subr.bf16.mxu1 (!%p139_p2), %v2760_v13  ;;  %v2855_v40 = vpack.c.bf16 (!%p139_p2), %v220_v25, %v217_v21  ;;  %v229_v44 = vand.u32 (!%p139_p2), 4294901760, %v188_v31  ;;  %v232_v45 = vand.u32 (!%p139_p2), 4294901760, %v189_v32  ;;  %v235_v46 = vand.u32 (!%p139_p2), 4294901760, %v190_v35 }
   0xd   : > { %s3240_s20 = smov (!%p163_p3, %s1640_s20), 3  ;;  %v238_v47 = vand.u32 4294901760, %v191_v36  ;;  %v2866_v49 = vsub.f32 %v180_v7, %v205_v11  ;;  %v303_v50 = vand.u32 4294901760, %v2845_v37  ;;  %v310_v51 = vand.u32 4294901760, %v2847_v38 }
   0xe   : > { %s1641_s8 = sshll.u32 %s3240_s20, 3  ;;  %v317_v52 = vand.u32 4294901760, %v2849_v39  ;;  %v2873_v53 = vsub.f32 %v2755_v8, %v208_v12  ;;  %v2877_v54 = vpack.c.bf16 %v226_v34, %v223_v30  ;;  %v297_v56 = vsub.f32 %v2822_v28, %v296_v43 }
   0xf   : > { %s166_s11 = scalar_lea.vmem %s3235_s0, %s1641_s8  ;;  %2290 = vmatpush3.bf16.msra.mxu0 %v2760_v13  ;;  %2482 = vmatpush3.bf16.msra.mxu1 %v2760_v13  ;;  %v2887_v58 = vpack.c.bf16 %v232_v45, %v229_v44  ;;  %v2889_v59 = vpack.c.bf16 %v238_v47, %v235_v46  ;;  %v324_v60 = vand.u32 4294901760, %v2866_v49  ;;  %v2893_v61 = vsub.f32 %v2765_v14, %v211_v17  ;;  %s172_s30 = scalar_lea.vmem %s3238_s3, %s1641_s8 }
  0x10   : > { %v2807_v23 = vld [vmem:[%s166_s11] sm:$0xff]  ;;  %2292 = vmatprep.subr.bf16.mxu0 %v2779_v16  ;;  %2484 = vmatprep.subr.bf16.mxu1 %v2779_v16  ;;  %v2825_v29 = vld [vmem:[%s166_s11 + $0x8] sm:$0xff]  ;;  %v304_v62 = vsub.f32 %v2845_v37, %v303_v50  ;;  %v311_v63 = vsub.f32 %v2847_v38, %v310_v51  ;;  %v318_v0 = vsub.f32 %v2849_v39, %v317_v52  ;;  %v331_v1 = vand.u32 4294901760, %v2873_v53 }
  0x11   : > { %v2820_v27 = vand.u32 4294901760, %v2807_v23  ;;  %v2859_v42 = vand.u32 4294901760, %v2825_v29  ;;  %v298_v2 = vand.u32 4294901760, %v297_v56  ;;  %v2906_v4 = vsub.f32 %v2770_v15, %v214_v18 }
  0x12   : > { %v2911_v5 = vsub.f32 %v2786_v19, %v217_v21  ;;  %v2915_v6 = vsub.f32 %v2791_v20, %v220_v25  ;;  %v2918_v7 = vsub.f32 %v2805_v22, %v223_v30  ;;  %v2920_v8 = vsub.f32 %v187_v26, %v226_v34 }
  0x13   : > { %v2836_v33 = vsub.f32 %v2807_v23, %v2820_v27  ;;  %2294 = vmatpush3.bf16.msra.mxu0 %v2779_v16  ;;  %2486 = vmatpush3.bf16.msra.mxu1 %v2779_v16  ;;  %v2884_v57 = vsub.f32 %v2825_v29, %v2859_v42  ;;  %v2922_v9 = vsub.f32 %v188_v31, %v229_v44  ;;  %v305_v17 = vand.u32 4294901760, %v304_v62 }
  0x14   : > { %2296 = vmatprep.subr.bf16.mxu0 %v2813_v24  ;;  %2488 = vmatprep.subr.bf16.mxu1 %v2813_v24  ;;  %v325_v11 = vsub.f32 %v2866_v49, %v324_v60  ;;  %v2925_v12 = vsub.f32 %v189_v32, %v232_v45  ;;  %v2927_v14 = vsub.f32 %v190_v35, %v235_v46  ;;  %v312_v18 = vand.u32 4294901760, %v311_v63 }
  0x15   : > { %v275_v41 = vand.u32 4294901760, %v2836_v33  ;;  %v285_v3 = vand.u32 4294901760, %v2884_v57  ;;  %v2929_v15 = vsub.f32 %v191_v36, %v238_v47  ;;  %v319_v19 = vand.u32 4294901760, %v318_v0 }
  0x16   : > { %v332_v20 = vsub.f32 %v2873_v53, %v331_v1  ;;  %v338_v22 = vand.u32 4294901760, %v2893_v61  ;;  %v345_v25 = vand.u32 4294901760, %v2906_v4  ;;  %v352_v26 = vand.u32 4294901760, %v2911_v5 }
  0x17   : > { %v276_v48 = vsub.f32 %v2836_v33, %v275_v41  ;;  %2298 = vmatpush3.bf16.msra.mxu0 %v2813_v24  ;;  %2490 = vmatpush3.bf16.msra.mxu1 %v2813_v24  ;;  %v286_v21 = vsub.f32 %v2884_v57, %v285_v3  ;;  %v359_v30 = vand.u32 4294901760, %v2915_v6  ;;  %v366_v31 = vand.u32 4294901760, %v2918_v7 }
  0x18   : > { %2300 = vmatprep.subr.bf16.mxu0 %v2855_v40  ;;  %2492 = vmatprep.subr.bf16.mxu1 %v2855_v40  ;;  %v373_v32 = vand.u32 4294901760, %v2920_v8  ;;  %v380_v34 = vand.u32 4294901760, %v2922_v9  ;;  %v387_v35 = vand.u32 4294901760, %v2925_v12  ;;  %v394_v36 = vand.u32 4294901760, %v2927_v14 }
  0x19   : > { %v277_v55 = vand.u32 4294901760, %v276_v48  ;;  %v401_v44 = vand.u32 4294901760, %v2929_v15  ;;  %v2951_v45 = vpack.c.bf16 %v303_v50, %v296_v43  ;;  %v2954_v46 = vpack.c.bf16 %v317_v52, %v310_v51 }
  0x1a   : > { %v2956_v47 = vpack.c.bf16 %v331_v1, %v324_v60  ;;  %v2958_v48 = vpack.c.bf16 %v345_v25, %v338_v22  ;;  %v2963_v56 = vpack.c.bf16 %v305_v17, %v298_v2  ;;  %v2965_v62 = vpack.c.bf16 %v373_v32, %v366_v31 }
  0x1b   : > { %1895 = vmatprep.mubr.f32.mxu0 %v277_v55  ;;  %2302 = vmatpush3.bf16.msra.mxu0 %v2855_v40  ;;  %v2960_v55 = vpack.c.bf16 %v359_v30, %v352_v26  ;;  %v2967_v63 = vpack.c.bf16 %v387_v35, %v380_v34  ;;  %v2969_v43 = vpack.c.bf16 %v401_v44, %v394_v36  ;;  %v287_v50 = vand.u32 4294901760, %v286_v21 }
  0x1c   : > { %2494 = vmatpush3.bf16.msra.mxu1 %v2855_v40  ;;  %2304 = vmatprep.subr.bf16.mxu0 %v2877_v54  ;;  %v326_v51 = vand.u32 4294901760, %v325_v11  ;;  %v333_v52 = vand.u32 4294901760, %v332_v20  ;;  %v2975_v60 = vpack.c.bf16 %v319_v19, %v312_v18  ;;  %v339_v0 = vsub.f32 %v2893_v61, %v338_v22 }
  0x1d   : > { %2496 = vmatprep.subr.bf16.mxu1 %v2877_v54  ;;  %v346_v1 = vsub.f32 %v2906_v4, %v345_v25  ;;  %v353_v18 = vsub.f32 %v2911_v5, %v352_v26  ;;  %v360_v19 = vsub.f32 %v2915_v6, %v359_v30  ;;  %v367_v20 = vsub.f32 %v2918_v7, %v366_v31 }
  0x1e   : > { %v2982_v2 = vpack.c.bf16 %v333_v52, %v326_v51  ;;  %v340_v11 = vand.u32 4294901760, %v339_v0  ;;  %v381_v52 = vsub.f32 %v2922_v9, %v380_v34  ;;  %v388_v31 = vsub.f32 %v2925_v12, %v387_v35 }
  0x1f   : > { %2306 = vmatpush3.bf16.msra.mxu0 %v2877_v54  ;;  %v347_v17 = vand.u32 4294901760, %v346_v1  ;;  %v354_v22 = vand.u32 4294901760, %v353_v18  ;;  %v361_v25 = vand.u32 4294901760, %v360_v19  ;;  %v368_v51 = vand.u32 4294901760, %v367_v20 }
  0x20   : > { %2498 = vmatpush3.bf16.msra.mxu1 %v2877_v54  ;;  %2308 = vmatprep.subr.bf16.mxu0 %v2887_v58  ;;  %v395_v0 = vsub.f32 %v2927_v14, %v394_v36  ;;  %v3024_v19 = vpack.c.bf16 %v2849_v39, %v2847_v38  ;;  %v3044_v38 = vpack.c.bf16 %v2915_v6, %v2911_v5 }
  0x21   : > { %2500 = vmatprep.subr.bf16.mxu1 %v2887_v58  ;;  %v2991_v21 = vpack.c.bf16 %v347_v17, %v340_v11  ;;  %v2996_v26 = vpack.c.bf16 %v361_v25, %v354_v22  ;;  %v389_v11 = vand.u32 4294901760, %v388_v31  ;;  %v402_v17 = vsub.f32 %v2929_v15, %v401_v44 }
  0x22   : > { %v396_v34 = vand.u32 4294901760, %v395_v0  ;;  %v3018_v44 = vpack.c.bf16 %v2845_v37, %v2822_v28  ;;  %v3032_v28 = vpack.c.bf16 %v2873_v53, %v2866_v49  ;;  %v3038_v37 = vpack.c.bf16 %v2906_v4, %v2893_v61 }
  0x23   : > { %2310 = vmatpush3.bf16.msra.mxu0 %v2887_v58  ;;  %v403_v35 = vand.u32 4294901760, %v402_v17  ;;  %v3050_v39 = vpack.c.bf16 %v2920_v8, %v2918_v7  ;;  %v3056_v49 = vpack.c.bf16 %v2925_v12, %v2922_v9  ;;  %v3062_v53 = vpack.c.bf16 %v2929_v15, %v2927_v14 }
  0x24   : > { %2312 = vmatprep.subr.bf16.mxu0 %v2889_v59  ;;  %2502 = vmatpush3.bf16.msra.mxu1 %v2887_v58 }
  0x25   : > { %2504 = vmatprep.subr.bf16.mxu1 %v2889_v59  ;;  %v3012_v36 = vpack.c.bf16 %v403_v35, %v396_v34 }
  0x27   : > { %2314 = vmatpush3.bf16.msra.mxu0 %v2889_v59 }
  0x28   : > { %2316 = vmatprep.subr.bf16.mxu0 %v2963_v56  ;;  %2506 = vmatpush3.bf16.msra.mxu1 %v2889_v59 }
  0x29   : > { %2508 = vmatprep.subr.bf16.mxu1 %v2963_v56 }
  0x2a   : > { %1896 = vmatmul.mubr.f32.vlgmr.msra.gmra.mrb[0].mxu0 %v287_v50  ;;  %v374_v50 = vsub.f32 %v2920_v8, %v373_v32  ;;  %v382_v32 = vand.u32 4294901760, %v381_v52 }
  0x2b   : > { %2318 = vmatpush3.bf16.msra.mxu0 %v2963_v56  ;;  %1930 = vmatprep.mubr.f32.mxu0 %v2820_v27 }
  0x2c   : > { %2320 = vmatprep.subr.bf16.mxu0 %v2975_v60  ;;  %v375_v30 = vand.u32 4294901760, %v374_v50  ;;  %v3008_v18 = vpack.c.bf16 %v389_v11, %v382_v32 }
  0x2e   : > { %v3003_v1 = vpack.c.bf16 %v375_v30, %v368_v51 }
  0x2f   : > { %2322 = vmatpush3.bf16.msra.mxu0 %v2975_v60 }
  0x30   : > { %2324 = vmatprep.subr.bf16.mxu0 %v2982_v2 }
  0x33   : > { %2326 = vmatpush3.bf16.msra.mxu0 %v2982_v2 }
  0x34   : > { %2328 = vmatprep.subr.bf16.mxu0 %v2991_v21 }
  0x37   : > { %2330 = vmatpush3.bf16.msra.mxu0 %v2991_v21 }
  0x38   : > { %2332 = vmatprep.subr.bf16.mxu0 %v2996_v26 }
  0x3b   : > { %2334 = vmatpush3.bf16.msra.mxu0 %v2996_v26 }
  0x3c   : > { %2336 = vmatprep.subr.bf16.mxu0 %v3003_v1 }
  0x3f   : > { %2338 = vmatpush3.bf16.msra.mxu0 %v3003_v1 }
  0x40   : > { %2340 = vmatprep.subr.bf16.mxu0 %v3008_v18 }
  0x43   : > { %2342 = vmatpush3.bf16.msra.mxu0 %v3008_v18 }
  0x44   : > { %2344 = vmatprep.subr.bf16.mxu0 %v3012_v36 }
  0x47   : > { %2346 = vmatpush3.bf16.msra.mxu0 %v3012_v36 }
  0x48   : > { %2348 = vmatprep.subr.bf16.mxu0 %v3018_v44 }
  0x4a   : > { %1931 = vmatmul.mubr.f32.vlgmr.msra.gmra.mrb[0].mxu0 %v2859_v42 }
  0x4b   : > { %2350 = vmatpush3.bf16.msra.mxu0 %v3018_v44  ;;  %1965 = vmatprep.mubr.f32.mxu0 %v2836_v33 }
  0x4c   : > { %2352 = vmatprep.subr.bf16.mxu0 %v3024_v19 }
  0x4f   : > { %2354 = vmatpush3.bf16.msra.mxu0 %v3024_v19 }
  0x50   : > { %2356 = vmatprep.subr.bf16.mxu0 %v3032_v28 }
  0x53   : > { %2358 = vmatpush3.bf16.msra.mxu0 %v3032_v28 }
  0x54   : > { %2360 = vmatprep.subr.bf16.mxu0 %v3038_v37 }
  0x57   : > { %2362 = vmatpush3.bf16.msra.mxu0 %v3038_v37 }
  0x58   : > { %2364 = vmatprep.subr.bf16.mxu0 %v3044_v38 }
  0x5b   : > { %2366 = vmatpush3.bf16.msra.mxu0 %v3044_v38 }
  0x5c   : > { %2368 = vmatprep.subr.bf16.mxu0 %v3050_v39 }
  0x5f   : > { %2370 = vmatpush3.bf16.msra.mxu0 %v3050_v39 }
  0x60   : > { %2372 = vmatprep.subr.bf16.mxu0 %v3056_v49 }
  0x63   : > { %2374 = vmatpush3.bf16.msra.mxu0 %v3056_v49 }
  0x64   : > { %2376 = vmatprep.subr.bf16.mxu0 %v3062_v53 }
  0x67   : > { %2378 = vmatpush3.bf16.msra.mxu0 %v3062_v53 }
  0x68   : > { %2380 = vmatprep.subr.bf16.mxu0 %v2757_v10 }
  0x6a   : > { %1966 = vmatmul.mubr.f32.vlgmr.msra.gmra.mrb[0].mxu0 %v2884_v57 }
  0x6b   : > { %2382 = vmatpush3.bf16.msra.mxu0 %v2757_v10  ;;  %2000 = vmatprep.mubr.f32.mxu0 %v275_v41 }
  0x6c   : > { %2384 = vmatprep.subr.bf16.mxu0 %v2760_v13 }
  0x6f   : > { %2386 = vmatpush3.bf16.msra.mxu0 %v2760_v13 }
  0x70   : > { %2388 = vmatprep.subr.bf16.mxu0 %v2779_v16 }
  0x73   : > { %2390 = vmatpush3.bf16.msra.mxu0 %v2779_v16 }
  0x74   : > { %2392 = vmatprep.subr.bf16.mxu0 %v2813_v24 }
  0x77   : > { %2394 = vmatpush3.bf16.msra.mxu0 %v2813_v24 }
  0x78   : > { %2396 = vmatprep.subr.bf16.mxu0 %v2855_v40 }
  0x7b   : > { %2398 = vmatpush3.bf16.msra.mxu0 %v2855_v40 }
  0x7c   : > { %2400 = vmatprep.subr.bf16.mxu0 %v2877_v54 }
  0x7f   : > { %2402 = vmatpush3.bf16.msra.mxu0 %v2877_v54 }
  0x80   : > { %2404 = vmatprep.subr.bf16.mxu0 %v2887_v58 }
  0x83   : > { %2406 = vmatpush3.bf16.msra.mxu0 %v2887_v58 }
  0x84   : > { %2408 = vmatprep.subr.bf16.mxu0 %v2889_v59 }
  0x87   : > { %2410 = vmatpush3.bf16.msra.mxu0 %v2889_v59 }
  0x88   : > { %2412 = vmatprep.subr.bf16.mxu0 %v2951_v45 }
  0x8a   : > { %2001 = vmatmul.mubr.f32.vlgmr.msra.gmra.mrb[0].mxu0 %v285_v3 }
  0x8b   : > { %2414 = vmatpush3.bf16.msra.mxu0 %v2951_v45  ;;  %2035 = vmatprep.mubr.f32.mxu0 %v2820_v27 }
  0x8c   : > { %2416 = vmatprep.subr.bf16.mxu0 %v2954_v46 }
  0x8f   : > { %2418 = vmatpush3.bf16.msra.mxu0 %v2954_v46 }
  0x90   : > { %2420 = vmatprep.subr.bf16.mxu0 %v2956_v47 }
  0x93   : > { %2422 = vmatpush3.bf16.msra.mxu0 %v2956_v47 }
  0x94   : > { %2424 = vmatprep.subr.bf16.mxu0 %v2958_v48 }
  0x97   : > { %2426 = vmatpush3.bf16.msra.mxu0 %v2958_v48 }
  0x98   : > { %2428 = vmatprep.subr.bf16.mxu0 %v2960_v55 }
  0x9b   : > { %2430 = vmatpush3.bf16.msra.mxu0 %v2960_v55 }
  0x9c   : > { %2432 = vmatprep.subr.bf16.mxu0 %v2965_v62 }
  0x9f   : > { %2434 = vmatpush3.bf16.msra.mxu0 %v2965_v62 }
  0xa0   : > { %2436 = vmatprep.subr.bf16.mxu0 %v2967_v63 }
  0xa3   : > { %2438 = vmatpush3.bf16.msra.mxu0 %v2967_v63 }
  0xa4   : > { %2440 = vmatprep.subr.bf16.mxu0 %v2969_v43 }
  0xa7   : > { %2442 = vmatpush3.bf16.msra.mxu0 %v2969_v43 }
  0xa8   : > { %2444 = vmatprep.subr.bf16.mxu0 %v2757_v10 }
  0xaa   : > { %2036 = vmatmul.mubr.f32.vlgmr.msra.gmra.mrb[0].mxu0 %v2859_v42 }
  0xab   : > { %2446 = vmatpush3.bf16.msra.mxu0 %v2757_v10  ;;  %2070 = vmatprep.mubr.f32.mxu0 %v2820_v27 }
  0xac   : > { %2448 = vmatprep.subr.bf16.mxu0 %v2760_v13 }
  0xaf   : > { %2450 = vmatpush3.bf16.msra.mxu0 %v2760_v13 }
  0xb0   : > { %2452 = vmatprep.subr.bf16.mxu0 %v2779_v16 }
  0xb3   : > { %2454 = vmatpush3.bf16.msra.mxu0 %v2779_v16 }
  0xb4   : > { %2456 = vmatprep.subr.bf16.mxu0 %v2813_v24 }
  0xb7   : > { %2458 = vmatpush3.bf16.msra.mxu0 %v2813_v24 }
  0xb8   : > { %2460 = vmatprep.subr.bf16.mxu0 %v2855_v40 }
  0xbb   : > { %2462 = vmatpush3.bf16.msra.mxu0 %v2855_v40 }
  0xbc   : > { %2464 = vmatprep.subr.bf16.mxu0 %v2877_v54 }
  0xbf   : > { %2466 = vmatpush3.bf16.msra.mxu0 %v2877_v54 }
  0xc0   : > { %2468 = vmatprep.subr.bf16.mxu0 %v2887_v58 }
  0xc3   : > { %2470 = vmatpush3.bf16.msra.mxu0 %v2887_v58 }
  0xc4   : > { %2472 = vmatprep.subr.bf16.mxu0 %v2889_v59 }
  0xc7   : > { %2474 = vmatpush3.bf16.msra.mxu0 %v2889_v59 }
  0xca   : > { %2071 = vmatmul.mubr.f32.vlgmr.msra.gmra.mrb[0].mxu0 %v2859_v42 }
 0x19d   : > { %v2072_v27 = vpop.f32.mrb[0].mxu0 }
 0x19e   : > { %v877_v33 = vsub.f32 %v2825_v29, %v2072_v27  ;;  %v866_v41 = vpop.f32.mrb[1].mxu0 }
 0x19f   : > { %v876_v57 = vsub.f32 %v2807_v23, %v866_v41 }
 0x1a0   : > { %v879_v61 = vmul.f32 %v877_v33, %v877_v33 }
 0x1a1   : > { %v878_v3 = vmul.f32 %v876_v57, %v876_v57 }
 0x1a2   : > { %v3126_v4 = vand.u32 4294901760, %v879_v61 }
 0x1a3   : > { %v3128_v5 = vand.u32 4294901760, %v878_v3 }
 0x1a4   : > { %v3131_v6 = vsub.f32 %v879_v61, %v3126_v4 }
 0x1a5   : > { %v962_v7 = vsub.f32 %v878_v3, %v3128_v5 }
 0x1a6   : > { %v973_v8 = vand.u32 4294901760, %v3131_v6 }
 0x1a7   : > { %v963_v42 = vand.u32 4294901760, %v962_v7 }
 0x1a8   : > { %v974_v9 = vsub.f32 %v3131_v6, %v973_v8 }
 0x1a9   : > { %v964_v12 = vsub.f32 %v962_v7, %v963_v42 }
 0x1aa   : > { %v975_v15 = vand.u32 4294901760, %v974_v9 }
 0x1ab   : > { %v965_v14 = vand.u32 4294901760, %v964_v12 }
 0x1ad   : > { %2105 = vmatprep.mubr.f32.mxu1 %v965_v14 }
 0x1ae   : > { %2106 = vmatmul.mubr.f32.vlgmr.msra.gmra.mrb[0].mxu1 %v975_v15 }
 0x1af   : > { %2510 = vmatpush3.bf16.msra.mxu1 %v2963_v56  ;;  %2140 = vmatprep.mubr.f32.mxu1 %v3128_v5 }
 0x1b0   : > { %2512 = vmatprep.subr.bf16.mxu1 %v2975_v60 }
 0x1b3   : > { %2514 = vmatpush3.bf16.msra.mxu1 %v2975_v60 }
 0x1b4   : > { %2516 = vmatprep.subr.bf16.mxu1 %v2982_v2 }
 0x1b7   : > { %2518 = vmatpush3.bf16.msra.mxu1 %v2982_v2 }
 0x1b8   : > { %2520 = vmatprep.subr.bf16.mxu1 %v2991_v21 }
 0x1bb   : > { %2522 = vmatpush3.bf16.msra.mxu1 %v2991_v21 }
 0x1bc   : > { %2524 = vmatprep.subr.bf16.mxu1 %v2996_v26 }
 0x1bf   : > { %2526 = vmatpush3.bf16.msra.mxu1 %v2996_v26 }
 0x1c0   : > { %2528 = vmatprep.subr.bf16.mxu1 %v3003_v1 }
 0x1c3   : > { %2530 = vmatpush3.bf16.msra.mxu1 %v3003_v1 }
 0x1c4   : > { %2532 = vmatprep.subr.bf16.mxu1 %v3008_v18 }
 0x1c7   : > { %2534 = vmatpush3.bf16.msra.mxu1 %v3008_v18 }
 0x1c8   : > { %2536 = vmatprep.subr.bf16.mxu1 %v3012_v36 }
 0x1cb   : > { %2538 = vmatpush3.bf16.msra.mxu1 %v3012_v36 }
 0x1cc   : > { %2540 = vmatprep.subr.bf16.mxu1 %v3018_v44 }
 0x1ce   : > { %2141 = vmatmul.mubr.f32.vlgmr.msra.gmra.mrb[0].mxu1 %v3126_v4 }
 0x1cf   : > { %2542 = vmatpush3.bf16.msra.mxu1 %v3018_v44  ;;  %2175 = vmatprep.mubr.f32.mxu1 %v962_v7 }
 0x1d0   : > { %2544 = vmatprep.subr.bf16.mxu1 %v3024_v19 }
 0x1d3   : > { %2546 = vmatpush3.bf16.msra.mxu1 %v3024_v19 }
 0x1d4   : > { %2548 = vmatprep.subr.bf16.mxu1 %v3032_v28 }
 0x1d7   : > { %2550 = vmatpush3.bf16.msra.mxu1 %v3032_v28 }
 0x1d8   : > { %2552 = vmatprep.subr.bf16.mxu1 %v3038_v37 }
 0x1db   : > { %2554 = vmatpush3.bf16.msra.mxu1 %v3038_v37 }
 0x1dc   : > { %2556 = vmatprep.subr.bf16.mxu1 %v3044_v38 }
 0x1df   : > { %2558 = vmatpush3.bf16.msra.mxu1 %v3044_v38 }
 0x1e0   : > { %2560 = vmatprep.subr.bf16.mxu1 %v3050_v39 }
 0x1e3   : > { %2562 = vmatpush3.bf16.msra.mxu1 %v3050_v39 }
 0x1e4   : > { %2564 = vmatprep.subr.bf16.mxu1 %v3056_v49 }
 0x1e7   : > { %2566 = vmatpush3.bf16.msra.mxu1 %v3056_v49 }
 0x1e8   : > { %2568 = vmatprep.subr.bf16.mxu1 %v3062_v53 }
 0x1eb   : > { %2570 = vmatpush3.bf16.msra.mxu1 %v3062_v53 }
 0x1ec   : > { %2572 = vmatprep.subr.bf16.mxu1 %v2757_v10 }
 0x1ee   : > { %2176 = vmatmul.mubr.f32.vlgmr.msra.gmra.mrb[0].mxu1 %v3131_v6 }
 0x1ef   : > { %2574 = vmatpush3.bf16.msra.mxu1 %v2757_v10  ;;  %2210 = vmatprep.mubr.f32.mxu1 %v963_v42 }
 0x1f0   : > { %2576 = vmatprep.subr.bf16.mxu1 %v2760_v13 }
 0x1f3   : > { %2578 = vmatpush3.bf16.msra.mxu1 %v2760_v13 }
 0x1f4   : > { %2580 = vmatprep.subr.bf16.mxu1 %v2779_v16 }
 0x1f7   : > { %2582 = vmatpush3.bf16.msra.mxu1 %v2779_v16 }
 0x1f8   : > { %2584 = vmatprep.subr.bf16.mxu1 %v2813_v24 }
 0x1fb   : > { %2586 = vmatpush3.bf16.msra.mxu1 %v2813_v24 }
 0x1fc   : > { %2588 = vmatprep.subr.bf16.mxu1 %v2855_v40 }
 0x1ff   : > { %2590 = vmatpush3.bf16.msra.mxu1 %v2855_v40 }
 0x200   : > { %2592 = vmatprep.subr.bf16.mxu1 %v2877_v54 }
 0x203   : > { %2594 = vmatpush3.bf16.msra.mxu1 %v2877_v54 }
 0x204   : > { %2596 = vmatprep.subr.bf16.mxu1 %v2887_v58 }
 0x207   : > { %2598 = vmatpush3.bf16.msra.mxu1 %v2887_v58 }
 0x208   : > { %2600 = vmatprep.subr.bf16.mxu1 %v2889_v59 }
 0x20b   : > { %2602 = vmatpush3.bf16.msra.mxu1 %v2889_v59 }
 0x20c   : > { %2604 = vmatprep.subr.bf16.mxu1 %v2951_v45 }
 0x20e   : > { %2211 = vmatmul.mubr.f32.vlgmr.msra.gmra.mrb[0].mxu1 %v973_v8 }
 0x20f   : > { %2606 = vmatpush3.bf16.msra.mxu1 %v2951_v45  ;;  %2245 = vmatprep.mubr.f32.mxu1 %v3128_v5 }
 0x210   : > { %2608 = vmatprep.subr.bf16.mxu1 %v2954_v46 }
 0x213   : > { %2610 = vmatpush3.bf16.msra.mxu1 %v2954_v46 }
 0x214   : > { %2612 = vmatprep.subr.bf16.mxu1 %v2956_v47 }
 0x217   : > { %2614 = vmatpush3.bf16.msra.mxu1 %v2956_v47 }
 0x218   : > { %2616 = vmatprep.subr.bf16.mxu1 %v2958_v48 }
 0x21b   : > { %2618 = vmatpush3.bf16.msra.mxu1 %v2958_v48 }
 0x21c   : > { %2620 = vmatprep.subr.bf16.mxu1 %v2960_v55 }
 0x21f   : > { %2622 = vmatpush3.bf16.msra.mxu1 %v2960_v55 }
 0x220   : > { %2624 = vmatprep.subr.bf16.mxu1 %v2965_v62 }
 0x223   : > { %2626 = vmatpush3.bf16.msra.mxu1 %v2965_v62 }
 0x224   : > { %2628 = vmatprep.subr.bf16.mxu1 %v2967_v63 }
 0x227   : > { %2630 = vmatpush3.bf16.msra.mxu1 %v2967_v63 }
 0x228   : > { %2632 = vmatprep.subr.bf16.mxu1 %v2969_v43 }
 0x22b   : > { %2634 = vmatpush3.bf16.msra.mxu1 %v2969_v43 }
 0x22c   : > { %2636 = vmatprep.subr.bf16.mxu1 %v2757_v10 }
 0x22e   : > { %2246 = vmatmul.mubr.f32.vlgmr.msra.gmra.mrb[0].mxu1 %v3126_v4 }
 0x22f   : > { %2638 = vmatpush3.bf16.msra.mxu1 %v2757_v10  ;;  %2280 = vmatprep.mubr.f32.mxu1 %v3128_v5 }
 0x230   : > { %2640 = vmatprep.subr.bf16.mxu1 %v2760_v13 }
 0x233   : > { %2642 = vmatpush3.bf16.msra.mxu1 %v2760_v13 }
 0x234   : > { %2644 = vmatprep.subr.bf16.mxu1 %v2779_v16 }
 0x237   : > { %2646 = vmatpush3.bf16.msra.mxu1 %v2779_v16 }
 0x238   : > { %2648 = vmatprep.subr.bf16.mxu1 %v2813_v24 }
 0x23b   : > { %2650 = vmatpush3.bf16.msra.mxu1 %v2813_v24 }
 0x23c   : > { %2652 = vmatprep.subr.bf16.mxu1 %v2855_v40 }
 0x23f   : > { %2654 = vmatpush3.bf16.msra.mxu1 %v2855_v40 }
 0x240   : > { %2656 = vmatprep.subr.bf16.mxu1 %v2877_v54 }
 0x243   : > { %2658 = vmatpush3.bf16.msra.mxu1 %v2877_v54 }
 0x244   : > { %2660 = vmatprep.subr.bf16.mxu1 %v2887_v58 }
 0x247   : > { %2662 = vmatpush3.bf16.msra.mxu1 %v2887_v58  ;;  %v1644_v58 = vld [vmem:[%s3236_s1] ss:$0 sm:$0xff] }
 0x248   : > { %2664 = vmatprep.subr.bf16.mxu1 %v2889_v59 }
 0x24b   : > { %2666 = vmatpush3.bf16.msra.mxu1 %v2889_v59 }
 0x24e   : > { %2281 = vmatmul.mubr.f32.vlgmr.msra.gmra.mrb[0].mxu1 %v3126_v4 }
 0x321   : > { %v2282_v10 = vpop.f32.mrb[0].mxu1 }
 0x322   : > { %v2667_v13 = vadd.f32 1e-05, %v2282_v10  ;;  %v1554_v16 = vpop.f32.mrb[1].mxu1 }
 0x323   : > { %v2668_v24 = vadd.f32 1e-05, %v1554_v16 }
 0x324   : > { %2697 = vrsqrt.f32 %v2667_v13 }
 0x325   : > { %2699 = vrsqrt.f32 %v2668_v24 }
 0x32e   : > { %v2698_v40 = vpop.eup %2697 }
 0x32f   : > { %v2700_v45 = vpop.eup %2699  ;;  %v1567_v54 = vmul.f32 %v2698_v40, %v2825_v29 }
 0x330   : > { %v1566_v46 = vmul.f32 %v2700_v45, %v2807_v23 }
 0x331   : > { %v1576_v47 = vmul.f32 %v1644_v58, %v1567_v54 }
 0x332   : > { %v1575_v59 = vmul.f32 %v1644_v58, %v1566_v46 }
 0x333   : > { %1578 = vst [vmem:[%s172_s30 + $0x8] sm:$0xff] %v1576_v47 }
 0x334   : > { %1577 = vst [vmem:[%s172_s30] sm:$0xff] %v1575_v59 }
 0x335 PF: > { %s13_s12 = sadd.s32 1, %s2707_s12  }
 0x336   : > { %p10_p4 = scmp.ge.s32.totalorder %s13_s12, 4  }
 0x338   :  { %12 = sbr.rel (!%p10_p4) target bundleno = 1 (0x1), region = 62 }

</bundles_post_ra>
